<compile_context>
chip_gen: v7x
topology: tpu7x:2x2x1
jax: 0.10.0
libtpu: 0.0.40
codegen_flags: <defaults>
</compile_context>

<pallas_src>
import numpy as np
import jax
import jax.numpy as jnp
from jax.experimental import pallas as pl
from jax.experimental.pallas import tpu as pltpu


def _mixup_affine_kernel(perm_ref,          # SMEM (B,) int32   (scalar prefetch)
                         lam_ref,           # SMEM (1,) float32
                         x_ref,             # VMEM (block_b, F) tile of x
                         x_hbm_ref,         # full x in HBM (pl.ANY) — gather source
                         w_ref,             # VMEM (F, C) fused weight (resident)
                         b_ref,             # VMEM (1, C) fused bias   (resident)
                         out_ref,           # VMEM (block_b, C) output tile
                         xp_buf,            # VMEM scratch (block_b, F): permuted rows
                         copy_sems):        # DMA sems, one per gathered row
    block_b = x_ref.shape[0]
    base = pl.program_id(0) * block_b

    # ---- In-kernel permutation gather (scalar prefetch + manual row DMAs) ----
    # Issue all row copies first (they overlap), then wait on each.
    copies = []
    for r in range(block_b):                    # block_b is a small static int
        src = perm_ref[base + r]                # dynamic SMEM scalar read
        cp = pltpu.make_async_copy(
            x_hbm_ref.at[pl.ds(src, 1)],        # (1, F) row in HBM
            xp_buf.at[pl.ds(r, 1)],             # (1, F) row of VMEM scratch
            copy_sems.at[r])
        cp.start()
        copies.append(cp)
    for cp in copies:
        cp.wait()

    # ---- mixup: lam*x + (1-lam)*x[perm]  ==  xp + lam*(x - xp) --------------
    lam = lam_ref[0]
    x = x_ref[...]
    xp = xp_buf[...]
    x_mix = xp + lam * (x - xp)

    # ReverseLayerF is the identity in the forward pass.
    # TODO(synk): gradient reversal (grad scaled by -alpha) needs a custom_vjp
    # wrapper around this call; not expressible in a forward-only kernel.

    # ---- single fused affine on the MXU (f32 accumulate) --------------------
    # (bf16 operands would be the next step if F / n_classes are ever scaled up;
    #  kept f32 here so the numerical check against the reference stays tight.)
    y = jnp.dot(x_mix, w_ref[...], preferred_element_type=jnp.float32)
    out_ref[...] = (y + b_ref[...]).astype(out_ref.dtype)


def init_params(key, in_size, fc_size, n_classes):
    """Deterministic nn.Linear-style init. Weights stored as (in, out)."""
    dims = [in_size] + list(fc_size) + [n_classes]
    params = []
    for i in range(len(dims) - 1):
        fan_in, fan_out = dims[i], dims[i + 1]
        key, kw, kb = jax.random.split(key, 3)
        bound = 1.0 / np.sqrt(fan_in)
        w = jax.random.uniform(kw, (fan_in, fan_out), jnp.float32, -bound, bound)
        b = jax.random.uniform(kb, (1, fan_out), jnp.float32, -bound, bound)
        params += [w, b]
    return params


def fuse_affine(params):
    """Collapse Linear->Linear->Linear (no nonlinearities) into one affine map."""
    w1, b1, w2, b2, w3, b3 = params
    w = w1 @ w2 @ w3                        # (in_size, n_classes)
    b = (b1 @ w2 + b2) @ w3 + b3            # (1, n_classes)
    return w, b


def mixup_domain_classifier_fwd(x, params, key, alpha=0.1, beta=1.0, block_b=None):
    """Returns (logits, permutation, lam) — same contract as the PyTorch module."""
    B, F = x.shape
    k_perm, k_lam = jax.random.split(key)
    if beta > 0:                             # static-python branch, like the module
        lam = jax.random.beta(k_lam, beta, beta).astype(jnp.float32)
    else:
        lam = jnp.float32(1.0)
    permutation = jax.random.permutation(k_perm, B).astype(jnp.int32)
    lam_arr = jnp.reshape(lam, (1,))

    w_fused, b_fused = fuse_affine(params)
    C = w_fused.shape[1]

    if block_b is None:
        block_b = min(B, 256)                # per-row DMA gather => keep tiles modest
    assert B % block_b == 0, "batch must be divisible by the batch tile"
    assert block_b == B or block_b % 8 == 0, "batch tile must be a multiple of 8"
    nb = B // block_b

    grid_spec = pltpu.PrefetchScalarGridSpec(
        num_scalar_prefetch=1,                                    # permutation -> SMEM
        grid=(nb,),
        in_specs=[
            pl.BlockSpec(memory_space=pltpu.MemorySpace.SMEM),    # lam (scalar)
            pl.BlockSpec((block_b, F), lambda i, perm: (i, 0)),   # x batch tile
            pl.BlockSpec(memory_space=pl.ANY),                    # x in HBM (gather src)
            pl.BlockSpec((F, C), lambda i, perm: (0, 0)),         # fused W, VMEM-resident
            pl.BlockSpec((1, C), lambda i, perm: (0, 0)),         # fused b, VMEM-resident
        ],
        out_specs=pl.BlockSpec((block_b, C), lambda i, perm: (i, 0)),
        scratch_shapes=[
            pltpu.VMEM((block_b, F), x.dtype),                    # gathered permuted rows
            pltpu.SemaphoreType.DMA((block_b,)),                  # one sem per row DMA
        ],
    )

    cost = pl.CostEstimate(
        flops=2 * B * F * C + 3 * B * F,
        transcendentals=0,
        bytes_accessed=4 * (2 * B * F + F * C + C + B * C),
    )

    out = pl.pallas_call(
        _mixup_affine_kernel,
        out_shape=jax.ShapeDtypeStruct((B, C), jnp.float32),
        grid_spec=grid_spec,
        compiler_params=pltpu.CompilerParams(
            dimension_semantics=("parallel",),        # v7x: batch tiles across 2 TCs
            vmem_limit_bytes=32 * 1024 * 1024,        # explicit, safe on v5e/v6e/v7x
        ),
        cost_estimate=cost,
    )(permutation, lam_arr, x, x, w_fused, b_fused)
    return out, permutation, lam


if __name__ == "__main__":
    # Small shapes consistent with the module: batch=16, in_size=32,
    # fc_size=(64, 64), n_classes=8.  block_b=8 -> grid of 2 so the batch
    # tiling and cross-tile permutation gather are actually exercised.
    B, IN_SIZE, FC, N_CLASSES = 16, 32, (64, 64), 8
    ALPHA, BETA = 0.1, 1.0

    root = jax.random.PRNGKey(0)
    k_x, k_params, k_fwd = jax.random.split(root, 3)

    x = jax.random.normal(k_x, (B, IN_SIZE), dtype=jnp.float32)
    params = init_params(k_params, IN_SIZE, FC, N_CLASSES)

    logits, perm, lam = mixup_domain_classifier_fwd(
        x, params, k_fwd, alpha=ALPHA, beta=BETA, block_b=8)
    logits = jax.block_until_ready(logits)

    # Pure-JAX reference with the ORIGINAL (unfused) 3-layer semantics.
    x_mix = lam * x + (1.0 - lam) * x[perm]
    w1, b1, w2, b2, w3, b3 = params
    ref = ((x_mix @ w1 + b1) @ w2 + b2) @ w3 + b3
    np.testing.assert_allclose(np.asarray(logits), np.asarray(ref),
                               rtol=1e-3, atol=1e-3)

    assert logits.shape == (B, N_CLASSES)
    assert perm.shape == (B,)
    print("KERNEL_OK")
</pallas_src>

<mosaic_0001>
module attributes {stable_mosaic.version = 11 : i64} {
  func.func @_mixup_affine_kernel(%arg0: i32, %arg1: memref<16xi32, #tpu.memory_space<smem>>, %arg2: memref<1xf32, #tpu.memory_space<smem>>, %arg3: memref<8x32xf32, #tpu.memory_space<vmem>>, %arg4: memref<16x32xf32, #tpu.memory_space<any>>, %arg5: memref<32x8xf32, #tpu.memory_space<vmem>>, %arg6: memref<1x8xf32, #tpu.memory_space<vmem>>, %arg7: memref<8x8xf32, #tpu.memory_space<vmem>>, %arg8: memref<8x32xf32, #tpu.memory_space<vmem>>, %arg9: memref<8x!tpu.dma_semaphore, #tpu.memory_space<semaphore_mem>>) attributes {dimension_semantics = [#tpu.dimension_semantics<parallel>], iteration_bounds = array<i64: 2>, scalar_prefetch = 1 : i64, scratch_operands = 2 : i64, tpu.core_type = #tpu.core_type<tc>, window_params = [{transform_indices = @transform_0, window_bounds = array<i64: 1>}, {transform_indices = @transform_1, window_bounds = array<i64: 8, 32>}, {}, {pipeline_mode = #tpu.pipeline_mode<synchronous>, transform_indices = @transform_3, window_bounds = array<i64: 32, 8>}, {pipeline_mode = #tpu.pipeline_mode<synchronous>, transform_indices = @transform_4, window_bounds = array<i64: 1, 8>}, {transform_indices = @transform_5, window_bounds = array<i64: 8, 8>}]} {
    %c8_i32 = arith.constant 8 : i32
    %0 = arith.muli %arg0, %c8_i32 : i32
    %c0_i32 = arith.constant 0 : i32
    %1 = arith.addi %0, %c0_i32 : i32
    %2 = arith.index_cast %1 : i32 to index
    %3 = memref.load %arg1[%2] : memref<16xi32, #tpu.memory_space<smem>>
    %c0_i32_0 = arith.constant 0 : i32
    %c0_i32_1 = arith.constant 0 : i32
    %4 = tpu.memref_slice %arg4[%3, %c0_i32_1] : memref<16x32xf32, #tpu.memory_space<any>> -> memref<1x32xf32, #tpu.memory_space<any>>
    %c0_i32_2 = arith.constant 0 : i32
    %c0_i32_3 = arith.constant 0 : i32
    %5 = tpu.memref_slice %arg8[%c0_i32_2, %c0_i32_3] : memref<8x32xf32, #tpu.memory_space<vmem>> -> memref<1x32xf32, #tpu.memory_space<vmem>>
    %6 = tpu.memref_slice %arg9[%c0_i32_0] : memref<8x!tpu.dma_semaphore, #tpu.memory_space<semaphore_mem>> -> memref<1x!tpu.dma_semaphore, #tpu.memory_space<semaphore_mem>>
    %7 = tpu.memref_squeeze %6 : memref<1x!tpu.dma_semaphore, #tpu.memory_space<semaphore_mem>> -> memref<!tpu.dma_semaphore, #tpu.memory_space<semaphore_mem>>
    tpu.enqueue_dma source(%4 : memref<1x32xf32, #tpu.memory_space<any>>) target(%5 : memref<1x32xf32, #tpu.memory_space<vmem>>) target_semaphore(%7 : memref<!tpu.dma_semaphore, #tpu.memory_space<semaphore_mem>>)
    %c1_i32 = arith.constant 1 : i32
    %8 = arith.addi %0, %c1_i32 : i32
    %9 = arith.index_cast %8 : i32 to index
    %10 = memref.load %arg1[%9] : memref<16xi32, #tpu.memory_space<smem>>
    %c1_i32_4 = arith.constant 1 : i32
    %c0_i32_5 = arith.constant 0 : i32
    %11 = tpu.memref_slice %arg4[%10, %c0_i32_5] : memref<16x32xf32, #tpu.memory_space<any>> -> memref<1x32xf32, #tpu.memory_space<any>>
    %c1_i32_6 = arith.constant 1 : i32
    %c0_i32_7 = arith.constant 0 : i32
    %12 = tpu.memref_slice %arg8[%c1_i32_6, %c0_i32_7] : memref<8x32xf32, #tpu.memory_space<vmem>> -> memref<1x32xf32, #tpu.memory_space<vmem>>
    %13 = tpu.memref_slice %arg9[%c1_i32_4] : memref<8x!tpu.dma_semaphore, #tpu.memory_space<semaphore_mem>> -> memref<1x!tpu.dma_semaphore, #tpu.memory_space<semaphore_mem>>
    %14 = tpu.memref_squeeze %13 : memref<1x!tpu.dma_semaphore, #tpu.memory_space<semaphore_mem>> -> memref<!tpu.dma_semaphore, #tpu.memory_space<semaphore_mem>>
    tpu.enqueue_dma source(%11 : memref<1x32xf32, #tpu.memory_space<any>>) target(%12 : memref<1x32xf32, #tpu.memory_space<vmem>>) target_semaphore(%14 : memref<!tpu.dma_semaphore, #tpu.memory_space<semaphore_mem>>)
    %c2_i32 = arith.constant 2 : i32
    %15 = arith.addi %0, %c2_i32 : i32
    %16 = arith.index_cast %15 : i32 to index
    %17 = memref.load %arg1[%16] : memref<16xi32, #tpu.memory_space<smem>>
    %c2_i32_8 = arith.constant 2 : i32
    %c0_i32_9 = arith.constant 0 : i32
    %18 = tpu.memref_slice %arg4[%17, %c0_i32_9] : memref<16x32xf32, #tpu.memory_space<any>> -> memref<1x32xf32, #tpu.memory_space<any>>
    %c2_i32_10 = arith.constant 2 : i32
    %c0_i32_11 = arith.constant 0 : i32
    %19 = tpu.memref_slice %arg8[%c2_i32_10, %c0_i32_11] : memref<8x32xf32, #tpu.memory_space<vmem>> -> memref<1x32xf32, #tpu.memory_space<vmem>>
    %20 = tpu.memref_slice %arg9[%c2_i32_8] : memref<8x!tpu.dma_semaphore, #tpu.memory_space<semaphore_mem>> -> memref<1x!tpu.dma_semaphore, #tpu.memory_space<semaphore_mem>>
    %21 = tpu.memref_squeeze %20 : memref<1x!tpu.dma_semaphore, #tpu.memory_space<semaphore_mem>> -> memref<!tpu.dma_semaphore, #tpu.memory_space<semaphore_mem>>
    tpu.enqueue_dma source(%18 : memref<1x32xf32, #tpu.memory_space<any>>) target(%19 : memref<1x32xf32, #tpu.memory_space<vmem>>) target_semaphore(%21 : memref<!tpu.dma_semaphore, #tpu.memory_space<semaphore_mem>>)
    %c3_i32 = arith.constant 3 : i32
    %22 = arith.addi %0, %c3_i32 : i32
    %23 = arith.index_cast %22 : i32 to index
    %24 = memref.load %arg1[%23] : memref<16xi32, #tpu.memory_space<smem>>
    %c3_i32_12 = arith.constant 3 : i32
    %c0_i32_13 = arith.constant 0 : i32
    %25 = tpu.memref_slice %arg4[%24, %c0_i32_13] : memref<16x32xf32, #tpu.memory_space<any>> -> memref<1x32xf32, #tpu.memory_space<any>>
    %c3_i32_14 = arith.constant 3 : i32
    %c0_i32_15 = arith.constant 0 : i32
    %26 = tpu.memref_slice %arg8[%c3_i32_14, %c0_i32_15] : memref<8x32xf32, #tpu.memory_space<vmem>> -> memref<1x32xf32, #tpu.memory_space<vmem>>
    %27 = tpu.memref_slice %arg9[%c3_i32_12] : memref<8x!tpu.dma_semaphore, #tpu.memory_space<semaphore_mem>> -> memref<1x!tpu.dma_semaphore, #tpu.memory_space<semaphore_mem>>
    %28 = tpu.memref_squeeze %27 : memref<1x!tpu.dma_semaphore, #tpu.memory_space<semaphore_mem>> -> memref<!tpu.dma_semaphore, #tpu.memory_space<semaphore_mem>>
    tpu.enqueue_dma source(%25 : memref<1x32xf32, #tpu.memory_space<any>>) target(%26 : memref<1x32xf32, #tpu.memory_space<vmem>>) target_semaphore(%28 : memref<!tpu.dma_semaphore, #tpu.memory_space<semaphore_mem>>)
    %c4_i32 = arith.constant 4 : i32
    %29 = arith.addi %0, %c4_i32 : i32
    %30 = arith.index_cast %29 : i32 to index
    %31 = memref.load %arg1[%30] : memref<16xi32, #tpu.memory_space<smem>>
    %c4_i32_16 = arith.constant 4 : i32
    %c0_i32_17 = arith.constant 0 : i32
    %32 = tpu.memref_slice %arg4[%31, %c0_i32_17] : memref<16x32xf32, #tpu.memory_space<any>> -> memref<1x32xf32, #tpu.memory_space<any>>
    %c4_i32_18 = arith.constant 4 : i32
    %c0_i32_19 = arith.constant 0 : i32
    %33 = tpu.memref_slice %arg8[%c4_i32_18, %c0_i32_19] : memref<8x32xf32, #tpu.memory_space<vmem>> -> memref<1x32xf32, #tpu.memory_space<vmem>>
    %34 = tpu.memref_slice %arg9[%c4_i32_16] : memref<8x!tpu.dma_semaphore, #tpu.memory_space<semaphore_mem>> -> memref<1x!tpu.dma_semaphore, #tpu.memory_space<semaphore_mem>>
    %35 = tpu.memref_squeeze %34 : memref<1x!tpu.dma_semaphore, #tpu.memory_space<semaphore_mem>> -> memref<!tpu.dma_semaphore, #tpu.memory_space<semaphore_mem>>
    tpu.enqueue_dma source(%32 : memref<1x32xf32, #tpu.memory_space<any>>) target(%33 : memref<1x32xf32, #tpu.memory_space<vmem>>) target_semaphore(%35 : memref<!tpu.dma_semaphore, #tpu.memory_space<semaphore_mem>>)
    %c5_i32 = arith.constant 5 : i32
    %36 = arith.addi %0, %c5_i32 : i32
    %37 = arith.index_cast %36 : i32 to index
    %38 = memref.load %arg1[%37] : memref<16xi32, #tpu.memory_space<smem>>
    %c5_i32_20 = arith.constant 5 : i32
    %c0_i32_21 = arith.constant 0 : i32
    %39 = tpu.memref_slice %arg4[%38, %c0_i32_21] : memref<16x32xf32, #tpu.memory_space<any>> -> memref<1x32xf32, #tpu.memory_space<any>>
    %c5_i32_22 = arith.constant 5 : i32
    %c0_i32_23 = arith.constant 0 : i32
    %40 = tpu.memref_slice %arg8[%c5_i32_22, %c0_i32_23] : memref<8x32xf32, #tpu.memory_space<vmem>> -> memref<1x32xf32, #tpu.memory_space<vmem>>
    %41 = tpu.memref_slice %arg9[%c5_i32_20] : memref<8x!tpu.dma_semaphore, #tpu.memory_space<semaphore_mem>> -> memref<1x!tpu.dma_semaphore, #tpu.memory_space<semaphore_mem>>
    %42 = tpu.memref_squeeze %41 : memref<1x!tpu.dma_semaphore, #tpu.memory_space<semaphore_mem>> -> memref<!tpu.dma_semaphore, #tpu.memory_space<semaphore_mem>>
    tpu.enqueue_dma source(%39 : memref<1x32xf32, #tpu.memory_space<any>>) target(%40 : memref<1x32xf32, #tpu.memory_space<vmem>>) target_semaphore(%42 : memref<!tpu.dma_semaphore, #tpu.memory_space<semaphore_mem>>)
    %c6_i32 = arith.constant 6 : i32
    %43 = arith.addi %0, %c6_i32 : i32
    %44 = arith.index_cast %43 : i32 to index
    %45 = memref.load %arg1[%44] : memref<16xi32, #tpu.memory_space<smem>>
    %c6_i32_24 = arith.constant 6 : i32
    %c0_i32_25 = arith.constant 0 : i32
    %46 = tpu.memref_slice %arg4[%45, %c0_i32_25] : memref<16x32xf32, #tpu.memory_space<any>> -> memref<1x32xf32, #tpu.memory_space<any>>
    %c6_i32_26 = arith.constant 6 : i32
    %c0_i32_27 = arith.constant 0 : i32
    %47 = tpu.memref_slice %arg8[%c6_i32_26, %c0_i32_27] : memref<8x32xf32, #tpu.memory_space<vmem>> -> memref<1x32xf32, #tpu.memory_space<vmem>>
    %48 = tpu.memref_slice %arg9[%c6_i32_24] : memref<8x!tpu.dma_semaphore, #tpu.memory_space<semaphore_mem>> -> memref<1x!tpu.dma_semaphore, #tpu.memory_space<semaphore_mem>>
    %49 = tpu.memref_squeeze %48 : memref<1x!tpu.dma_semaphore, #tpu.memory_space<semaphore_mem>> -> memref<!tpu.dma_semaphore, #tpu.memory_space<semaphore_mem>>
    tpu.enqueue_dma source(%46 : memref<1x32xf32, #tpu.memory_space<any>>) target(%47 : memref<1x32xf32, #tpu.memory_space<vmem>>) target_semaphore(%49 : memref<!tpu.dma_semaphore, #tpu.memory_space<semaphore_mem>>)
    %c7_i32 = arith.constant 7 : i32
    %50 = arith.addi %0, %c7_i32 : i32
    %51 = arith.index_cast %50 : i32 to index
    %52 = memref.load %arg1[%51] : memref<16xi32, #tpu.memory_space<smem>>
    %c7_i32_28 = arith.constant 7 : i32
    %c0_i32_29 = arith.constant 0 : i32
    %53 = tpu.memref_slice %arg4[%52, %c0_i32_29] : memref<16x32xf32, #tpu.memory_space<any>> -> memref<1x32xf32, #tpu.memory_space<any>>
    %c7_i32_30 = arith.constant 7 : i32
    %c0_i32_31 = arith.constant 0 : i32
    %54 = tpu.memref_slice %arg8[%c7_i32_30, %c0_i32_31] : memref<8x32xf32, #tpu.memory_space<vmem>> -> memref<1x32xf32, #tpu.memory_space<vmem>>
    %55 = tpu.memref_slice %arg9[%c7_i32_28] : memref<8x!tpu.dma_semaphore, #tpu.memory_space<semaphore_mem>> -> memref<1x!tpu.dma_semaphore, #tpu.memory_space<semaphore_mem>>
    %56 = tpu.memref_squeeze %55 : memref<1x!tpu.dma_semaphore, #tpu.memory_space<semaphore_mem>> -> memref<!tpu.dma_semaphore, #tpu.memory_space<semaphore_mem>>
    tpu.enqueue_dma source(%53 : memref<1x32xf32, #tpu.memory_space<any>>) target(%54 : memref<1x32xf32, #tpu.memory_space<vmem>>) target_semaphore(%56 : memref<!tpu.dma_semaphore, #tpu.memory_space<semaphore_mem>>)
    %c0_i32_32 = arith.constant 0 : i32
    %c0_i32_33 = arith.constant 0 : i32
    %57 = tpu.memref_slice %arg4[%3, %c0_i32_33] : memref<16x32xf32, #tpu.memory_space<any>> -> memref<1x32xf32, #tpu.memory_space<any>>
    %c0_i32_34 = arith.constant 0 : i32
    %c0_i32_35 = arith.constant 0 : i32
    %58 = tpu.memref_slice %arg8[%c0_i32_34, %c0_i32_35] : memref<8x32xf32, #tpu.memory_space<vmem>> -> memref<1x32xf32, #tpu.memory_space<vmem>>
    %59 = tpu.memref_slice %arg9[%c0_i32_32] : memref<8x!tpu.dma_semaphore, #tpu.memory_space<semaphore_mem>> -> memref<1x!tpu.dma_semaphore, #tpu.memory_space<semaphore_mem>>
    %60 = tpu.memref_squeeze %59 : memref<1x!tpu.dma_semaphore, #tpu.memory_space<semaphore_mem>> -> memref<!tpu.dma_semaphore, #tpu.memory_space<semaphore_mem>>
    tpu.wait_dma2 semaphore(%60 : memref<!tpu.dma_semaphore, #tpu.memory_space<semaphore_mem>>) src(%57 : memref<1x32xf32, #tpu.memory_space<any>>) dst(%58 : memref<1x32xf32, #tpu.memory_space<vmem>>)
    %c1_i32_36 = arith.constant 1 : i32
    %c0_i32_37 = arith.constant 0 : i32
    %61 = tpu.memref_slice %arg4[%10, %c0_i32_37] : memref<16x32xf32, #tpu.memory_space<any>> -> memref<1x32xf32, #tpu.memory_space<any>>
    %c1_i32_38 = arith.constant 1 : i32
    %c0_i32_39 = arith.constant 0 : i32
    %62 = tpu.memref_slice %arg8[%c1_i32_38, %c0_i32_39] : memref<8x32xf32, #tpu.memory_space<vmem>> -> memref<1x32xf32, #tpu.memory_space<vmem>>
    %63 = tpu.memref_slice %arg9[%c1_i32_36] : memref<8x!tpu.dma_semaphore, #tpu.memory_space<semaphore_mem>> -> memref<1x!tpu.dma_semaphore, #tpu.memory_space<semaphore_mem>>
    %64 = tpu.memref_squeeze %63 : memref<1x!tpu.dma_semaphore, #tpu.memory_space<semaphore_mem>> -> memref<!tpu.dma_semaphore, #tpu.memory_space<semaphore_mem>>
    tpu.wait_dma2 semaphore(%64 : memref<!tpu.dma_semaphore, #tpu.memory_space<semaphore_mem>>) src(%61 : memref<1x32xf32, #tpu.memory_space<any>>) dst(%62 : memref<1x32xf32, #tpu.memory_space<vmem>>)
    %c2_i32_40 = arith.constant 2 : i32
    %c0_i32_41 = arith.constant 0 : i32
    %65 = tpu.memref_slice %arg4[%17, %c0_i32_41] : memref<16x32xf32, #tpu.memory_space<any>> -> memref<1x32xf32, #tpu.memory_space<any>>
    %c2_i32_42 = arith.constant 2 : i32
    %c0_i32_43 = arith.constant 0 : i32
    %66 = tpu.memref_slice %arg8[%c2_i32_42, %c0_i32_43] : memref<8x32xf32, #tpu.memory_space<vmem>> -> memref<1x32xf32, #tpu.memory_space<vmem>>
    %67 = tpu.memref_slice %arg9[%c2_i32_40] : memref<8x!tpu.dma_semaphore, #tpu.memory_space<semaphore_mem>> -> memref<1x!tpu.dma_semaphore, #tpu.memory_space<semaphore_mem>>
    %68 = tpu.memref_squeeze %67 : memref<1x!tpu.dma_semaphore, #tpu.memory_space<semaphore_mem>> -> memref<!tpu.dma_semaphore, #tpu.memory_space<semaphore_mem>>
    tpu.wait_dma2 semaphore(%68 : memref<!tpu.dma_semaphore, #tpu.memory_space<semaphore_mem>>) src(%65 : memref<1x32xf32, #tpu.memory_space<any>>) dst(%66 : memref<1x32xf32, #tpu.memory_space<vmem>>)
    %c3_i32_44 = arith.constant 3 : i32
    %c0_i32_45 = arith.constant 0 : i32
    %69 = tpu.memref_slice %arg4[%24, %c0_i32_45] : memref<16x32xf32, #tpu.memory_space<any>> -> memref<1x32xf32, #tpu.memory_space<any>>
    %c3_i32_46 = arith.constant 3 : i32
    %c0_i32_47 = arith.constant 0 : i32
    %70 = tpu.memref_slice %arg8[%c3_i32_46, %c0_i32_47] : memref<8x32xf32, #tpu.memory_space<vmem>> -> memref<1x32xf32, #tpu.memory_space<vmem>>
    %71 = tpu.memref_slice %arg9[%c3_i32_44] : memref<8x!tpu.dma_semaphore, #tpu.memory_space<semaphore_mem>> -> memref<1x!tpu.dma_semaphore, #tpu.memory_space<semaphore_mem>>
    %72 = tpu.memref_squeeze %71 : memref<1x!tpu.dma_semaphore, #tpu.memory_space<semaphore_mem>> -> memref<!tpu.dma_semaphore, #tpu.memory_space<semaphore_mem>>
    tpu.wait_dma2 semaphore(%72 : memref<!tpu.dma_semaphore, #tpu.memory_space<semaphore_mem>>) src(%69 : memref<1x32xf32, #tpu.memory_space<any>>) dst(%70 : memref<1x32xf32, #tpu.memory_space<vmem>>)
    %c4_i32_48 = arith.constant 4 : i32
    %c0_i32_49 = arith.constant 0 : i32
    %73 = tpu.memref_slice %arg4[%31, %c0_i32_49] : memref<16x32xf32, #tpu.memory_space<any>> -> memref<1x32xf32, #tpu.memory_space<any>>
    %c4_i32_50 = arith.constant 4 : i32
    %c0_i32_51 = arith.constant 0 : i32
    %74 = tpu.memref_slice %arg8[%c4_i32_50, %c0_i32_51] : memref<8x32xf32, #tpu.memory_space<vmem>> -> memref<1x32xf32, #tpu.memory_space<vmem>>
    %75 = tpu.memref_slice %arg9[%c4_i32_48] : memref<8x!tpu.dma_semaphore, #tpu.memory_space<semaphore_mem>> -> memref<1x!tpu.dma_semaphore, #tpu.memory_space<semaphore_mem>>
    %76 = tpu.memref_squeeze %75 : memref<1x!tpu.dma_semaphore, #tpu.memory_space<semaphore_mem>> -> memref<!tpu.dma_semaphore, #tpu.memory_space<semaphore_mem>>
    tpu.wait_dma2 semaphore(%76 : memref<!tpu.dma_semaphore, #tpu.memory_space<semaphore_mem>>) src(%73 : memref<1x32xf32, #tpu.memory_space<any>>) dst(%74 : memref<1x32xf32, #tpu.memory_space<vmem>>)
    %c5_i32_52 = arith.constant 5 : i32
    %c0_i32_53 = arith.constant 0 : i32
    %77 = tpu.memref_slice %arg4[%38, %c0_i32_53] : memref<16x32xf32, #tpu.memory_space<any>> -> memref<1x32xf32, #tpu.memory_space<any>>
    %c5_i32_54 = arith.constant 5 : i32
    %c0_i32_55 = arith.constant 0 : i32
    %78 = tpu.memref_slice %arg8[%c5_i32_54, %c0_i32_55] : memref<8x32xf32, #tpu.memory_space<vmem>> -> memref<1x32xf32, #tpu.memory_space<vmem>>
    %79 = tpu.memref_slice %arg9[%c5_i32_52] : memref<8x!tpu.dma_semaphore, #tpu.memory_space<semaphore_mem>> -> memref<1x!tpu.dma_semaphore, #tpu.memory_space<semaphore_mem>>
    %80 = tpu.memref_squeeze %79 : memref<1x!tpu.dma_semaphore, #tpu.memory_space<semaphore_mem>> -> memref<!tpu.dma_semaphore, #tpu.memory_space<semaphore_mem>>
    tpu.wait_dma2 semaphore(%80 : memref<!tpu.dma_semaphore, #tpu.memory_space<semaphore_mem>>) src(%77 : memref<1x32xf32, #tpu.memory_space<any>>) dst(%78 : memref<1x32xf32, #tpu.memory_space<vmem>>)
    %c6_i32_56 = arith.constant 6 : i32
    %c0_i32_57 = arith.constant 0 : i32
    %81 = tpu.memref_slice %arg4[%45, %c0_i32_57] : memref<16x32xf32, #tpu.memory_space<any>> -> memref<1x32xf32, #tpu.memory_space<any>>
    %c6_i32_58 = arith.constant 6 : i32
    %c0_i32_59 = arith.constant 0 : i32
    %82 = tpu.memref_slice %arg8[%c6_i32_58, %c0_i32_59] : memref<8x32xf32, #tpu.memory_space<vmem>> -> memref<1x32xf32, #tpu.memory_space<vmem>>
    %83 = tpu.memref_slice %arg9[%c6_i32_56] : memref<8x!tpu.dma_semaphore, #tpu.memory_space<semaphore_mem>> -> memref<1x!tpu.dma_semaphore, #tpu.memory_space<semaphore_mem>>
    %84 = tpu.memref_squeeze %83 : memref<1x!tpu.dma_semaphore, #tpu.memory_space<semaphore_mem>> -> memref<!tpu.dma_semaphore, #tpu.memory_space<semaphore_mem>>
    tpu.wait_dma2 semaphore(%84 : memref<!tpu.dma_semaphore, #tpu.memory_space<semaphore_mem>>) src(%81 : memref<1x32xf32, #tpu.memory_space<any>>) dst(%82 : memref<1x32xf32, #tpu.memory_space<vmem>>)
    %c7_i32_60 = arith.constant 7 : i32
    %c0_i32_61 = arith.constant 0 : i32
    %85 = tpu.memref_slice %arg4[%52, %c0_i32_61] : memref<16x32xf32, #tpu.memory_space<any>> -> memref<1x32xf32, #tpu.memory_space<any>>
    %c7_i32_62 = arith.constant 7 : i32
    %c0_i32_63 = arith.constant 0 : i32
    %86 = tpu.memref_slice %arg8[%c7_i32_62, %c0_i32_63] : memref<8x32xf32, #tpu.memory_space<vmem>> -> memref<1x32xf32, #tpu.memory_space<vmem>>
    %87 = tpu.memref_slice %arg9[%c7_i32_60] : memref<8x!tpu.dma_semaphore, #tpu.memory_space<semaphore_mem>> -> memref<1x!tpu.dma_semaphore, #tpu.memory_space<semaphore_mem>>
    %88 = tpu.memref_squeeze %87 : memref<1x!tpu.dma_semaphore, #tpu.memory_space<semaphore_mem>> -> memref<!tpu.dma_semaphore, #tpu.memory_space<semaphore_mem>>
    tpu.wait_dma2 semaphore(%88 : memref<!tpu.dma_semaphore, #tpu.memory_space<semaphore_mem>>) src(%85 : memref<1x32xf32, #tpu.memory_space<any>>) dst(%86 : memref<1x32xf32, #tpu.memory_space<vmem>>)
    %c0 = arith.constant 0 : index
    %89 = memref.load %arg2[%c0] : memref<1xf32, #tpu.memory_space<smem>>
    %c0_64 = arith.constant 0 : index
    %c0_65 = arith.constant 0 : index
    %90 = vector.load %arg3[%c0_64, %c0_65] : memref<8x32xf32, #tpu.memory_space<vmem>>, vector<8x32xf32>
    %c0_66 = arith.constant 0 : index
    %c0_67 = arith.constant 0 : index
    %91 = vector.load %arg8[%c0_66, %c0_67] : memref<8x32xf32, #tpu.memory_space<vmem>>, vector<8x32xf32>
    %92 = arith.subf %90, %91 : vector<8x32xf32>
    %93 = vector.broadcast %89 : f32 to vector<8x32xf32>
    %94 = arith.mulf %93, %92 : vector<8x32xf32>
    %95 = arith.addf %91, %94 : vector<8x32xf32>
    %c0_68 = arith.constant 0 : index
    %c0_69 = arith.constant 0 : index
    %96 = vector.load %arg5[%c0_68, %c0_69] : memref<32x8xf32, #tpu.memory_space<vmem>>, vector<32x8xf32>
    %cst = arith.constant dense<0.000000e+00> : vector<8x8xf32>
    %97 = tpu.matmul %95, %96, %cst {dimension_numbers = #tpu.dot_dimension_numbers<[1], [0], [0], [1], [0, 0, 1, 1], [], []>} : vector<8x32xf32>, vector<32x8xf32>, vector<8x8xf32> -> vector<8x8xf32>
    %c0_70 = arith.constant 0 : index
    %c0_71 = arith.constant 0 : index
    %98 = vector.load %arg6[%c0_70, %c0_71] : memref<1x8xf32, #tpu.memory_space<vmem>>, vector<1x8xf32>
    %99 = vector.broadcast %98 : vector<1x8xf32> to vector<8x8xf32>
    %100 = arith.addf %97, %99 : vector<8x8xf32>
    %c0_72 = arith.constant 0 : index
    %c0_73 = arith.constant 0 : index
    %101 = vector.load %arg7[%c0_72, %c0_73] : memref<8x8xf32, #tpu.memory_space<vmem>>, vector<8x8xf32>
    tpu.vector_store %arg7[%c0_72, %c0_73], %100 {strides = array<i32>} : memref<8x8xf32, #tpu.memory_space<vmem>>, vector<8x8xf32>,
    return
  }
  func.func @transform_0(%arg0: i32, %arg1: memref<16xi32, #tpu.memory_space<smem>>) -> i32 {
    %c0_i32 = arith.constant 0 : i32
    %c0_i32_0 = arith.constant 0 : i32
    return %c0_i32 : i32
  }
  func.func @transform_1(%arg0: i32, %arg1: memref<16xi32, #tpu.memory_space<smem>>) -> (i32, i32) {
    %c0_i32 = arith.constant 0 : i32
    %c0_i32_0 = arith.constant 0 : i32
    return %arg0, %c0_i32 : i32, i32
  }
  func.func @transform_3(%arg0: i32, %arg1: memref<16xi32, #tpu.memory_space<smem>>) -> (i32, i32) {
    %c0_i32 = arith.constant 0 : i32
    %c0_i32_0 = arith.constant 0 : i32
    %c0_i32_1 = arith.constant 0 : i32
    return %c0_i32, %c0_i32_0 : i32, i32
  }
  func.func @transform_4(%arg0: i32, %arg1: memref<16xi32, #tpu.memory_space<smem>>) -> (i32, i32) {
    %c0_i32 = arith.constant 0 : i32
    %c0_i32_0 = arith.constant 0 : i32
    %c0_i32_1 = arith.constant 0 : i32
    return %c0_i32, %c0_i32_0 : i32, i32
  }
  func.func @transform_5(%arg0: i32, %arg1: memref<16xi32, #tpu.memory_space<smem>>) -> (i32, i32) {
    %c0_i32 = arith.constant 0 : i32
    %c0_i32_0 = arith.constant 0 : i32
    return %arg0, %c0_i32 : i32, i32
  }
}

</mosaic_0001>

<bundles_post_ra>
// kernel: tpu_custom_call.1
= control target key start
LH: loop header
LB: loop body
LE: loop exit
PB: predicated region body
PF: predicated region fallthrough
CT: control target
= control target key end

     0   :  { %s1115_s0 = inlined_call_operand.vmem [shape: s32[16], index: 0, kind: input, shape index: {}]   ;;  %s1116_s1 = inlined_call_operand.<no memory space> [shape: f32[1], index: 1, kind: input, shape index: {}]   ;;  %s1117_s2 = inlined_call_operand.vmem [shape: f32[16,32], index: 2, kind: input, shape index: {}]   ;;  %s1118_s3 = inlined_call_operand.vmem [shape: f32[16,32], index: 3, kind: input, shape index: {}]   ;;  %s1119_s4 = inlined_call_operand.vmem [shape: f32[32,8], index: 4, kind: input, shape index: {}]   ;;  %s1120_s5 = inlined_call_operand.vmem [shape: f32[1,8], index: 5, kind: input, shape index: {}]   ;;  %s1121_s6 = inlined_call_operand.vmem [shape: f32[16,8], index: 6, kind: output, shape index: {}]  }
   0x1   :  { %s11_s23 = sshll.u32 %s1115_s0, 4  ;;  %15 = sst [smem:[#allocation6]] %s1116_s1  ;;  %s12_s23 = int_to_ptr.vmem [resolvable:$true] %s11_s23 }
   0x2   :  { %s960_s26 = scalar_lea.vmem %s12_s23, 16  ;;  %p965_p1 = scmp.lt.s32.totalorder %s12_s23, %s12_s23 }
   0x3   :  { %p961_p0 = scmp.ne.s32.totalorder %s12_s23, %s960_s26  ;;  %p966_p2 = scmp.lt.s32.totalorder %s960_s26, %s960_s26 }
   0x5   :  { %p967_p3 = por %p966_p2, %p965_p1 }
   0x7   :  { %p968_p4 = pnand %p967_p3, %p961_p0 }
   0x9   :  { %971 = shalt.err (!%p968_p4)  }
   0xa   :  { %s998_s27 = smov [#allocation5]  }
   0xb   :  { %14 = dma.vmem_to_smem %s12_s23, 16, %s998_s27, [#allocation4] }
   0xc   :  { %976 = dma.done.wait [#allocation4], 16 }
   0xd   :  { %977 = vsyncadd [#allocation4], 4294967280 }
   0xe   :  { %17 = sfence }
   0xf   :  { %s1043_s28 = smov 0  }
  0x10 LB: > { %s906_s0 = sadd.s32 4294967295, %s996_s28   ;;  %p910_p5 = scmp.ge.s32.totalorder %s996_s28, 1  ;;  %s996_s28 = sphi %s1043_s28, %s23_s28  }
  0x11   : > { %p170_p6 = scmp.lt.s32.totalorder %s996_s28, 3 }
  0x13   : > { %p171_p7 = pnand %p910_p5, %p170_p6 }
  0x14   : > { %p194_p8 = scmp.lt.s32.totalorder (!%p171_p7), %s906_s0, 1  ;;  %s1051_s1 = sshll.u32 (!%p171_p7), %s906_s0, 3 }
  0x15   : > { %174 = sbr.rel (%p171_p7) target bundleno = 343 (0x157), region = 36  ;;  %s203_s29 = sld [smem:[#allocation5 + %s1051_s1]] (!%p171_p7) }
  0x1b   : > { %s204_s15 = scalar_lea.vmem (!%p171_p7), %s1118_s3, %s203_s29 }
  0x1c   : > { %s1123_s0 = smov (!%p194_p8, %s906_s0), 1  ;;  %v222_v0 = vld [vmem:[%s204_s15] sm:$0x1] }
  0x1d   : > { %s911_s30 = sshll.u32 %s1123_s0, 3  ;;  %223 = vst [vmem:[#allocation2] sm:$0x1] %v222_v0 }
  0x1e   : > { %s1057_s9 = scalar_lea.vmem %s1117_s2, %s911_s30  ;;  %s1062_s12 = scalar_lea.vmem %s1121_s6, %s911_s30 }
  0x1f   : > { %248 = vsyncadd [#allocation3], 16  ;;  %s249_s16 = sadd.s32 1, %s1051_s1 }
  0x20   : > { %s250_s17 = sld [smem:[#allocation5 + %s249_s16]] }
  0x26   : > { %s251_s20 = scalar_lea.vmem %s1118_s3, %s250_s17 }
  0x27   : > { %v271_v1 = vld [vmem:[%s251_s20] sm:$0x1] }
  0x28   : > { %272 = vst [vmem:[#allocation2 + $0x1] sm:$0x1] %v271_v1 }
  0x29   : > { %297 = vsyncadd [#allocation3 + $0x1], 16  ;;  %s298_s21 = sadd.s32 2, %s1051_s1 }
  0x2a   : > { %s299_s22 = sld [smem:[#allocation5 + %s298_s21]] }
  0x30   : > { %s300_s25 = scalar_lea.vmem %s1118_s3, %s299_s22 }
  0x31   : > { %v320_v2 = vld [vmem:[%s300_s25] sm:$0x1] }
  0x32   : > { %321 = vst [vmem:[#allocation2 + $0x2] sm:$0x1] %v320_v2 }
  0x33   : > { %346 = vsyncadd [#allocation3 + $0x2], 16  ;;  %s347_s26 = sadd.s32 3, %s1051_s1 }
  0x34   : > { %s348_s27 = sld [smem:[#allocation5 + %s347_s26]] }
  0x3a   : > { %s349_s30 = scalar_lea.vmem %s1118_s3, %s348_s27 }
  0x3b   : > { %v369_v3 = vld [vmem:[%s349_s30] sm:$0x1] }
  0x3c   : > { %370 = vst [vmem:[#allocation2 + $0x3] sm:$0x1] %v369_v3 }
  0x3d   : > { %395 = vsyncadd [#allocation3 + $0x3], 16  ;;  %s396_s7 = sadd.s32 4, %s1051_s1 }
  0x3e   : > { %s397_s8 = sld [smem:[#allocation5 + %s396_s7]] }
  0x44   : > { %s398_s13 = scalar_lea.vmem %s1118_s3, %s397_s8 }
  0x45   : > { %v418_v4 = vld [vmem:[%s398_s13] sm:$0x1] }
  0x46   : > { %419 = vst [vmem:[#allocation2 + $0x4] sm:$0x1] %v418_v4 }
  0x47   : > { %444 = vsyncadd [#allocation3 + $0x4], 16  ;;  %s445_s14 = sadd.s32 5, %s1051_s1 }
  0x48   : > { %s446_s15 = sld [smem:[#allocation5 + %s445_s14]] }
  0x4e   : > { %s447_s18 = scalar_lea.vmem %s1118_s3, %s446_s15 }
  0x4f   : > { %v467_v5 = vld [vmem:[%s447_s18] sm:$0x1] }
  0x50   : > { %468 = vst [vmem:[#allocation2 + $0x5] sm:$0x1] %v467_v5 }
  0x51   : > { %493 = vsyncadd [#allocation3 + $0x5], 16  ;;  %s494_s19 = sadd.s32 6, %s1051_s1 }
  0x52   : > { %s495_s20 = sld [smem:[#allocation5 + %s494_s19]] }
  0x58   : > { %s496_s23 = scalar_lea.vmem %s1118_s3, %s495_s20 }
  0x59   : > { %v516_v6 = vld [vmem:[%s496_s23] sm:$0x1] }
  0x5a   : > { %517 = vst [vmem:[#allocation2 + $0x6] sm:$0x1] %v516_v6 }
  0x5b   : > { %542 = vsyncadd [#allocation3 + $0x6], 16  ;;  %s543_s24 = sadd.s32 7, %s1051_s1 }
  0x5c   : > { %s544_s25 = sld [smem:[#allocation5 + %s543_s24]] }
  0x62   : > { %s545_s0 = scalar_lea.vmem %s1118_s3, %s544_s25 }
  0x63   : > { %v565_v7 = vld [vmem:[%s545_s0] sm:$0x1] }
  0x64   : > { %566 = vst [vmem:[#allocation2 + $0x7] sm:$0x1] %v565_v7 }
  0x65   : > { %591 = vsyncadd [#allocation3 + $0x7], 16 }
  0x66   : > { %978 = dma.done.wait [#allocation3], 16 }
  0x67   : > { %979 = vsyncadd [#allocation3], 4294967280 }
  0x68   : > { %980 = dma.done.wait [#allocation3 + $0x1], 16 }
  0x69   : > { %981 = vsyncadd [#allocation3 + $0x1], 4294967280 }
  0x6a   : > { %982 = dma.done.wait [#allocation3 + $0x2], 16 }
  0x6b   : > { %983 = vsyncadd [#allocation3 + $0x2], 4294967280 }
  0x6c   : > { %984 = dma.done.wait [#allocation3 + $0x3], 16 }
  0x6d   : > { %985 = vsyncadd [#allocation3 + $0x3], 4294967280 }
  0x6e   : > { %986 = dma.done.wait [#allocation3 + $0x4], 16 }
  0x6f   : > { %987 = vsyncadd [#allocation3 + $0x4], 4294967280 }
  0x70   : > { %988 = dma.done.wait [#allocation3 + $0x5], 16 }
  0x71   : > { %989 = vsyncadd [#allocation3 + $0x5], 4294967280 }
  0x72   : > { %990 = dma.done.wait [#allocation3 + $0x6], 16 }
  0x73   : > { %991 = vsyncadd [#allocation3 + $0x6], 4294967280 }
  0x74   : > { %992 = dma.done.wait [#allocation3 + $0x7], 16 }
  0x75   : > { %993 = vsyncadd [#allocation3 + $0x7], 4294967280  ;;  %v999_v8 = vmov 0.0|0.0   ;;  %vm1000_vm0 = vmmov 0   ;;  %v1001_v9 = vmov 0.0   ;;  %s609_s1 = sld [smem:[#allocation6]] }
  0x76   : > { %942 = vmatprep.subr.bf16.mxu0 %v999_v8  ;;  %939 = vmatprep.mubr.msk.f32.mxu0 %vm1000_vm0, %v1001_v9  ;;  %v616_v10 = vld [vmem:[%s1119_s4] sm:$0xff]  ;;  %v617_v11 = vld [vmem:[%s1119_s4 + $0x8] sm:$0xff]  ;;  %v618_v12 = vld [vmem:[%s1119_s4 + $0x10] sm:$0xff]  ;;  %vm627_vm1 = vcmask 261120   ;;  %vm701_vm2 = vcmask 64512  }
  0x77   : > { %v943_v13 = vpack.c.bf16 %v617_v11, %v616_v10  ;;  %v619_v14 = vld [vmem:[%s1119_s4 + $0x18] sm:$0xff]  ;;  %v610_v15 = vld [vmem:[%s1057_s9] sm:$0xff] }
  0x78   : > { %v611_v16 = vld [vmem:[#allocation2] sm:$0xff]  ;;  %v946_v19 = vpack.c.bf16 %v619_v14, %v618_v12 }
  0x79   : > { %v612_v18 = vsub.f32 %v610_v15, %v611_v16  ;;  %944 = vmatpush3.bf16.msra.mxu0 %v943_v13  ;;  %v914_v22 = vld [vmem:[%s1120_s5] ss:$0 sm:$0xff] }
  0x7a   : > { %945 = vmatprep.subr.bf16.mxu0 %v999_v8 }
  0x7b   : > { %v613_v17 = vstv %s609_s1 }
  0x7c   : > { %v614_v20 = vmul.f32 %v613_v17, %v612_v18 }
  0x7d   : > { %947 = vmatpush3.bf16.msra.mxu0 %v946_v19 }
  0x7e   : > { %v615_v21 = vadd.f32 %v614_v20, %v611_v16 }
  0x80   : > { %940 = vmatmul.mubr.msk.f32.vlgmr.msra.gmra.mrb[0].mxu0 %vm627_vm1, %v615_v21 }
 0x153   : > { %v697_v23 = vpop.f32.mrb[0].mxu0 }
 0x154   : > { %v698_v24 = vadd.f32 %v914_v22, %v697_v23  ;;  %v941_v25 = vpop.f32.mrb[1].mxu0 }
 0x156   : > { %702 = vst.msk [vmem:[%s1062_s12] sm:$0xff] %vm701_vm2, %v698_v24 }
 0x157 PF: > { %s23_s28 = sadd.s32 1, %s996_s28  }
 0x158   : > { %p20_p9 = scmp.ge.s32.totalorder %s23_s28, 4  }
 0x15a   :  { %22 = sbr.rel (!%p20_p9) target bundleno = 16 (0x10), region = 415 }
 0x161   :  { %722 = vsyncmov [#allocation3] }
 0x164   :  { %s723_s9 = vpop.sfrf %722 }
 0x165   :  { %p918_p10 = scmp.ne.s32.totalorder %s723_s9, 0 }
 0x167   :  { %727 = shalt.err (%p918_p10)  }
 0x168   :  { %729 = vsyncmov [#allocation3 + $0x1] }
 0x16b   :  { %s730_s17 = vpop.sfrf %729 }
 0x16c   :  { %p919_p11 = scmp.ne.s32.totalorder %s730_s17, 0 }
 0x16e   :  { %734 = shalt.err (%p919_p11)  }
 0x16f   :  { %736 = vsyncmov [#allocation3 + $0x2] }
 0x172   :  { %s737_s18 = vpop.sfrf %736 }
 0x173   :  { %p920_p12 = scmp.ne.s32.totalorder %s737_s18, 0 }
 0x175   :  { %741 = shalt.err (%p920_p12)  }
 0x176   :  { %743 = vsyncmov [#allocation3 + $0x3] }
 0x179   :  { %s744_s12 = vpop.sfrf %743 }
 0x17a   :  { %p921_p13 = scmp.ne.s32.totalorder %s744_s12, 0 }
 0x17c   :  { %748 = shalt.err (%p921_p13)  }
 0x17d   :  { %750 = vsyncmov [#allocation3 + $0x4] }
 0x180   :  { %s751_s19 = vpop.sfrf %750 }
 0x181   :  { %p922_p0 = scmp.ne.s32.totalorder %s751_s19, 0 }
 0x183   :  { %755 = shalt.err (%p922_p0)  }
 0x184   :  { %757 = vsyncmov [#allocation3 + $0x5] }
 0x187   :  { %s758_s2 = vpop.sfrf %757 }
 0x188   :  { %p923_p1 = scmp.ne.s32.totalorder %s758_s2, 0 }
 0x18a   :  { %762 = shalt.err (%p923_p1)  }
 0x18b   :  { %764 = vsyncmov [#allocation3 + $0x6] }
 0x18e   :  { %s765_s3 = vpop.sfrf %764 }
 0x18f   :  { %p924_p2 = scmp.ne.s32.totalorder %s765_s3, 0 }
 0x191   :  { %769 = shalt.err (%p924_p2)  }
 0x192   :  { %771 = vsyncmov [#allocation3 + $0x7] }
 0x195   :  { %s772_s4 = vpop.sfrf %771 }
 0x196   :  { %p925_p3 = scmp.ne.s32.totalorder %s772_s4, 0 }
 0x198   :  { %776 = shalt.err (%p925_p3)  }

</bundles_post_ra>
